<compile_context>
chip_gen: v7x
topology: tpu7x:2x2x1
jax: 0.10.0
libtpu: 0.0.40
codegen_flags: <defaults>
</compile_context>

<pallas_src>
import jax
import jax.numpy as jnp
from jax.experimental import pallas as pl
from jax.experimental.pallas import tpu as pltpu


def _round_up(x, m):
    return (x + m - 1) // m * m


def _mlp_head_kernel(x_ref, w1_ref, b1_ref, w2_ref, b2_ref, out_ref, h_ref):
    # x_ref:  (tm, 2H)  bf16    w1_ref: (2H, Hp) bf16    b1_ref: (1, Hp) f32
    # w2_ref: (Hp, tn)  bf16    b2_ref: (1, tn)  f32
    # out_ref: (tm, tn) f32     h_ref (VMEM scratch): (tm, Hp) bf16

    # First matmul + tanh computed ONCE per row tile (vocab axis j iterates
    # fastest, so j == 0 is the first visit of this row tile); cached in VMEM.
    @pl.when(pl.program_id(1) == 0)
    def _():
        h = jnp.dot(x_ref[...], w1_ref[...], preferred_element_type=jnp.float32)
        h = jnp.tanh(h + b1_ref[...])          # bias + tanh in f32
        h_ref[...] = h.astype(h_ref.dtype)     # store bf16 for the MXU

    # Dropout: eval-mode identity.
    logits = jnp.dot(h_ref[...], w2_ref[...], preferred_element_type=jnp.float32)
    out_ref[...] = (logits + b2_ref[...]).astype(out_ref.dtype)


def mlp_head(hidden_states, w1, b1, w2, b2, *, tm=256, tn=2048):
    """hidden_states: (..., 2*dim_hidden) float32
       w1: (2H, H), b1: (H,), w2: (H, V), b2: (V,)
       returns: (..., V) float32
    """
    *lead, two_h = hidden_states.shape
    H = w1.shape[1]
    V = w2.shape[1]
    assert w1.shape[0] == two_h and w2.shape[0] == H

    x2d = hidden_states.reshape(-1, two_h)
    N = x2d.shape[0]

    # ---- pad to vreg/MXU friendly sizes; clamp tiles for small problems ----
    Hp = _round_up(H, 128)                 # lane-dense tanh intermediate / w2 rows
    tm = min(tm, _round_up(N, 8))          # row tile (multiple of 8)
    tn = min(tn, _round_up(V, 128))        # vocab tile (multiple of 128)
    Np = _round_up(N, tm)
    Vp = _round_up(V, tn)

    # bf16 MXU operands; biases stay f32 (accumulation is f32 in-kernel).
    x_p = jnp.zeros((Np, two_h), jnp.bfloat16).at[:N, :].set(x2d.astype(jnp.bfloat16))
    w1_p = jnp.zeros((two_h, Hp), jnp.bfloat16).at[:, :H].set(w1.astype(jnp.bfloat16))
    b1_p = jnp.zeros((1, Hp), jnp.float32).at[:, :H].set(b1.astype(jnp.float32))
    w2_p = jnp.zeros((Hp, Vp), jnp.bfloat16).at[:H, :V].set(w2.astype(jnp.bfloat16))
    b2_p = jnp.zeros((1, Vp), jnp.float32).at[:, :V].set(b2.astype(jnp.float32))

    grid = (Np // tm, Vp // tn)

    out = pl.pallas_call(
        _mlp_head_kernel,
        out_shape=jax.ShapeDtypeStruct((Np, Vp), jnp.float32),
        grid_spec=pltpu.PrefetchScalarGridSpec(
            num_scalar_prefetch=0,
            grid=grid,
            in_specs=[
                pl.BlockSpec((tm, two_h), lambda i, j: (i, 0)),   # x row tile
                pl.BlockSpec((two_h, Hp), lambda i, j: (0, 0)),   # w1 (tiny, resident)
                pl.BlockSpec((1, Hp), lambda i, j: (0, 0)),       # b1
                pl.BlockSpec((Hp, tn), lambda i, j: (0, j)),      # w2 vocab tile (streamed)
                pl.BlockSpec((1, tn), lambda i, j: (0, j)),       # b2 vocab tile
            ],
            out_specs=pl.BlockSpec((tm, tn), lambda i, j: (i, j)),
            scratch_shapes=[pltpu.VMEM((tm, Hp), jnp.bfloat16)],  # cached tanh(h)
        ),
        compiler_params=pltpu.CompilerParams(
            # rows independent (shardable across v7x's 2 TCs); vocab axis carries
            # the cached-h scratch dependency -> arbitrary.
            dimension_semantics=("parallel", "arbitrary"),
            vmem_limit_bytes=64 * 1024 * 1024,
        ),
    )(x_p, w1_p, b1_p, w2_p, b2_p)

    return out[:N, :V].reshape(*lead, V)


def init_params(key, dim_hidden, vocab_size):
    """Deterministic init mimicking nn.Linear's uniform(-1/sqrt(fan_in), 1/sqrt(fan_in))."""
    k1, k2, k3, k4 = jax.random.split(key, 4)
    fan1 = 2 * dim_hidden
    fan2 = dim_hidden
    bound1 = 1.0 / jnp.sqrt(fan1)
    bound2 = 1.0 / jnp.sqrt(fan2)
    w1 = jax.random.uniform(k1, (fan1, dim_hidden), jnp.float32, -bound1, bound1)
    b1 = jax.random.uniform(k2, (dim_hidden,), jnp.float32, -bound1, bound1)
    w2 = jax.random.uniform(k3, (fan2, vocab_size), jnp.float32, -bound2, bound2)
    b2 = jax.random.uniform(k4, (vocab_size,), jnp.float32, -bound2, bound2)
    return w1, b1, w2, b2


if __name__ == "__main__":
    # opt = {'dim_hidden': 32, 'vocab_size': 128, 'hidden_dropout_prob': 0.1}
    dim_hidden = 32
    vocab_size = 128
    batch, seq = 2, 8

    key = jax.random.PRNGKey(0)
    k_x, k_p = jax.random.split(key)
    hidden_states = jax.random.normal(k_x, (batch, seq, 2 * dim_hidden), jnp.float32)
    w1, b1, w2, b2 = init_params(k_p, dim_hidden, vocab_size)

    out = mlp_head(hidden_states, w1, b1, w2, b2)
    out = jax.block_until_ready(out)
    assert out.shape == (batch, seq, vocab_size)

    # Reference with matching bf16 operand casts / f32 accumulation.
    h_ref = jnp.tanh(
        jnp.dot(hidden_states.astype(jnp.bfloat16), w1.astype(jnp.bfloat16),
                preferred_element_type=jnp.float32) + b1)
    ref_bf16 = jnp.dot(h_ref.astype(jnp.bfloat16), w2.astype(jnp.bfloat16),
                       preferred_element_type=jnp.float32) + b2
    assert jnp.allclose(out, ref_bf16, atol=1e-3, rtol=1e-3)

    # Sanity check against the full-f32 reference (loose tolerance for bf16 MXU inputs).
    ref_f32 = jnp.tanh(hidden_states @ w1 + b1) @ w2 + b2
    assert jnp.allclose(out, ref_f32, atol=5e-2, rtol=5e-2)

    print("KERNEL_OK")
</pallas_src>

<mosaic_0001>
module attributes {stable_mosaic.version = 11 : i64} {
  func.func @_mlp_head_kernel(%arg0: i32, %arg1: i32, %arg2: memref<16x64xbf16, #tpu.memory_space<vmem>>, %arg3: memref<64x128xbf16, #tpu.memory_space<vmem>>, %arg4: memref<1x128xf32, #tpu.memory_space<vmem>>, %arg5: memref<128x128xbf16, #tpu.memory_space<vmem>>, %arg6: memref<1x128xf32, #tpu.memory_space<vmem>>, %arg7: memref<16x128xf32, #tpu.memory_space<vmem>>, %arg8: memref<16x128xbf16, #tpu.memory_space<vmem>>) attributes {dimension_semantics = [#tpu.dimension_semantics<parallel>, #tpu.dimension_semantics<arbitrary>], iteration_bounds = array<i64: 1, 1>, scalar_prefetch = 0 : i64, scratch_operands = 1 : i64, tpu.core_type = #tpu.core_type<tc>, window_params = [{transform_indices = @transform_0, window_bounds = array<i64: 16, 64>}, {pipeline_mode = #tpu.pipeline_mode<synchronous>, transform_indices = @transform_1, window_bounds = array<i64: 64, 128>}, {pipeline_mode = #tpu.pipeline_mode<synchronous>, transform_indices = @transform_2, window_bounds = array<i64: 1, 128>}, {transform_indices = @transform_3, window_bounds = array<i64: 128, 128>}, {transform_indices = @transform_4, window_bounds = array<i64: 1, 128>}, {transform_indices = @transform_5, window_bounds = array<i64: 16, 128>}]} {
    %c0_i32 = arith.constant 0 : i32
    %0 = arith.cmpi eq, %arg1, %c0_i32 : i32
    %1 = arith.extui %0 : i1 to i32
    %c0_i32_0 = arith.constant 0 : i32
    %2 = arith.cmpi ne, %1, %c0_i32_0 : i32
    scf.if %2 {
      %c0_8 = arith.constant 0 : index
      %c0_9 = arith.constant 0 : index
      %10 = vector.load %arg2[%c0_8, %c0_9] : memref<16x64xbf16, #tpu.memory_space<vmem>>, vector<16x64xbf16>
      %c0_10 = arith.constant 0 : index
      %c0_11 = arith.constant 0 : index
      %11 = vector.load %arg3[%c0_10, %c0_11] : memref<64x128xbf16, #tpu.memory_space<vmem>>, vector<64x128xbf16>
      %cst_12 = arith.constant dense<0.000000e+00> : vector<16x128xf32>
      %12 = tpu.matmul %10, %11, %cst_12 {dimension_numbers = #tpu.dot_dimension_numbers<[1], [0], [0], [1], [0, 0, 1, 1], [], []>} : vector<16x64xbf16>, vector<64x128xbf16>, vector<16x128xf32> -> vector<16x128xf32>
      %c0_13 = arith.constant 0 : index
      %c0_14 = arith.constant 0 : index
      %13 = vector.load %arg4[%c0_13, %c0_14] : memref<1x128xf32, #tpu.memory_space<vmem>>, vector<1x128xf32>
      %14 = vector.broadcast %13 : vector<1x128xf32> to vector<16x128xf32>
      %15 = arith.addf %12, %14 : vector<16x128xf32>
      %16 = math.tanh %15 : vector<16x128xf32>
      %17 = arith.truncf %16 : vector<16x128xf32> to vector<16x128xbf16>
      %c0_15 = arith.constant 0 : index
      %c0_16 = arith.constant 0 : index
      %18 = vector.load %arg8[%c0_15, %c0_16] : memref<16x128xbf16, #tpu.memory_space<vmem>>, vector<16x128xbf16>
      tpu.vector_store %arg8[%c0_15, %c0_16], %17 {strides = array<i32>} : memref<16x128xbf16, #tpu.memory_space<vmem>>, vector<16x128xbf16>,
    } else {
    }
    %c0 = arith.constant 0 : index
    %c0_1 = arith.constant 0 : index
    %3 = vector.load %arg8[%c0, %c0_1] : memref<16x128xbf16, #tpu.memory_space<vmem>>, vector<16x128xbf16>
    %c0_2 = arith.constant 0 : index
    %c0_3 = arith.constant 0 : index
    %4 = vector.load %arg5[%c0_2, %c0_3] : memref<128x128xbf16, #tpu.memory_space<vmem>>, vector<128x128xbf16>
    %cst = arith.constant dense<0.000000e+00> : vector<16x128xf32>
    %5 = tpu.matmul %3, %4, %cst {dimension_numbers = #tpu.dot_dimension_numbers<[1], [0], [0], [1], [0, 0, 1, 1], [], []>} : vector<16x128xbf16>, vector<128x128xbf16>, vector<16x128xf32> -> vector<16x128xf32>
    %c0_4 = arith.constant 0 : index
    %c0_5 = arith.constant 0 : index
    %6 = vector.load %arg6[%c0_4, %c0_5] : memref<1x128xf32, #tpu.memory_space<vmem>>, vector<1x128xf32>
    %7 = vector.broadcast %6 : vector<1x128xf32> to vector<16x128xf32>
    %8 = arith.addf %5, %7 : vector<16x128xf32>
    %c0_6 = arith.constant 0 : index
    %c0_7 = arith.constant 0 : index
    %9 = vector.load %arg7[%c0_6, %c0_7] : memref<16x128xf32, #tpu.memory_space<vmem>>, vector<16x128xf32>
    tpu.vector_store %arg7[%c0_6, %c0_7], %8 {strides = array<i32>} : memref<16x128xf32, #tpu.memory_space<vmem>>, vector<16x128xf32>,
    return
  }
  func.func @transform_0(%arg0: i32, %arg1: i32) -> (i32, i32) {
    %c0_i32 = arith.constant 0 : i32
    %c0_i32_0 = arith.constant 0 : i32
    return %arg0, %c0_i32 : i32, i32
  }
  func.func @transform_1(%arg0: i32, %arg1: i32) -> (i32, i32) {
    %c0_i32 = arith.constant 0 : i32
    %c0_i32_0 = arith.constant 0 : i32
    %c0_i32_1 = arith.constant 0 : i32
    return %c0_i32, %c0_i32_0 : i32, i32
  }
  func.func @transform_2(%arg0: i32, %arg1: i32) -> (i32, i32) {
    %c0_i32 = arith.constant 0 : i32
    %c0_i32_0 = arith.constant 0 : i32
    %c0_i32_1 = arith.constant 0 : i32
    return %c0_i32, %c0_i32_0 : i32, i32
  }
  func.func @transform_3(%arg0: i32, %arg1: i32) -> (i32, i32) {
    %c0_i32 = arith.constant 0 : i32
    %c0_i32_0 = arith.constant 0 : i32
    return %c0_i32, %arg1 : i32, i32
  }
  func.func @transform_4(%arg0: i32, %arg1: i32) -> (i32, i32) {
    %c0_i32 = arith.constant 0 : i32
    %c0_i32_0 = arith.constant 0 : i32
    return %c0_i32, %arg1 : i32, i32
  }
  func.func @transform_5(%arg0: i32, %arg1: i32) -> (i32, i32) {
    %c0_i32 = arith.constant 0 : i32
    return %arg0, %arg1 : i32, i32
  }
}

</mosaic_0001>

<bundles_post_ra>
// kernel: tpu_custom_call.1
= control target key start
LH: loop header
LB: loop body
LE: loop exit
PB: predicated region body
PF: predicated region fallthrough
CT: control target
= control target key end

     0   :  { %10 = vsyncpa [#allocation4], 0  ;;  %s680_s0 = inlined_call_operand.hbm [shape: bf16[16,64], index: 0, kind: input, shape index: {}]   ;;  %s681_s1 = inlined_call_operand.hbm [shape: bf16[64,128], index: 1, kind: input, shape index: {}]   ;;  %s682_s2 = inlined_call_operand.hbm [shape: f32[1,128], index: 2, kind: input, shape index: {}]   ;;  %s683_s3 = inlined_call_operand.hbm [shape: bf16[128,128], index: 3, kind: input, shape index: {}]   ;;  %s684_s4 = inlined_call_operand.hbm [shape: f32[1,128], index: 4, kind: input, shape index: {}]   ;;  %s685_s5 = inlined_call_operand.hbm [shape: f32[16,128], index: 5, kind: output, shape index: {}]  }
   0x1   :  { %11 = vsyncpa [#allocation7], 0 }
   0x2   :  { %12 = vsyncpa [#allocation10], 0 }
   0x3   :  { %13 = vsyncpa [#allocation5], 0  ;;  %s550_s18 = smov [#allocation6]   ;;  %s551_s20 = smov [#allocation9]  }
   0x4   :  { %s31_s19 = sshll.u32 %s550_s18, 4  ;;  %s53_s21 = sshll.u32 %s551_s20, 4  ;;  %s32_s19 = int_to_ptr.vmem [resolvable:$true] %s31_s19  ;;  %s592_s21 = int_to_ptr.vmem [resolvable:$true] %s53_s21 }
   0x5   :  { %s410_s24 = scalar_lea.hbm %s681_s1, 512 }
   0x6   :  { %p411_p0 = scmp.ne.s32.totalorder %s681_s1, %s410_s24  ;;  %p414_p1 = scmp.lt.u32.totalorder %s410_s24, %s681_s1 }
   0x8   :  { %p416_p2 = pnand %p414_p1, %p411_p0 }
   0xa   :  { %419 = shalt.err (!%p416_p2)
}
   0xb   :  { %s420_s29 = scalar_lea.vmem %s32_s19, 512  ;;  %p425_p4 = scmp.lt.s32.totalorder %s32_s19, %s32_s19 }
   0xc   :  { %p421_p3 = scmp.ne.s32.totalorder %s32_s19, %s420_s29  ;;  %p426_p5 = scmp.lt.s32.totalorder %s420_s29, %s420_s29 }
   0xe   :  { %p427_p6 = por %p426_p5, %p425_p4 }
  0x10   :  { %p428_p7 = pnand %p427_p6, %p421_p3 }
  0x12   :  { %431 = shalt.err (!%p428_p7)
}
  0x13   :  { %s552_s30 = smov 64   ;;  %s553_s6 = smov 4  }
  0x14   :  { %37 = dma.hbm_to_vmem [thread:$0]  %s681_s1, 512, %s32_s19, [#allocation7], %s552_s30, %s552_s30, %s553_s6  }
  0x15   :  { %s432_s11 = scalar_lea.hbm %s683_s3, 1024 }
  0x16   :  { %p433_p8 = scmp.ne.s32.totalorder %s683_s3, %s432_s11  ;;  %p436_p9 = scmp.lt.u32.totalorder %s432_s11, %s683_s3 }
  0x18   :  { %p438_p10 = pnand %p436_p9, %p433_p8 }
  0x1a   :  { %441 = shalt.err (!%p438_p10)
}
  0x1b   :  { %s442_s16 = scalar_lea.vmem %s592_s21, 1024  ;;  %p447_p12 = scmp.lt.s32.totalorder %s592_s21, %s592_s21 }
  0x1c   :  { %p443_p11 = scmp.ne.s32.totalorder %s592_s21, %s442_s16  ;;  %p448_p13 = scmp.lt.s32.totalorder %s442_s16, %s442_s16 }
  0x1e   :  { %p449_p0 = por %p448_p13, %p447_p12 }
  0x20   :  { %p450_p1 = pnand %p449_p0, %p443_p11 }
  0x22   :  { %453 = shalt.err (!%p450_p1)
}
  0x23   :  { %59 = dma.hbm_to_vmem [thread:$0]  %s683_s3, 1024, %s592_s21, [#allocation10], %s552_s30, %s552_s30, %s553_s6  }
  0x24   :  { %s554_s18 = smov [#allocation3]   ;;  %s555_s20 = smov [#allocation8]  }
  0x25   :  { %s19_s19 = sshll.u32 %s554_s18, 4  ;;  %s44_s22 = sshll.u32 %s555_s20, 4  ;;  %s20_s19 = int_to_ptr.vmem [resolvable:$true] %s19_s19  ;;  %s45_s22 = int_to_ptr.vmem [resolvable:$true] %s44_s22 }
  0x26   :  { %s454_s25 = scalar_lea.hbm %s680_s0, 128 }
  0x27   :  { %p455_p2 = scmp.ne.s32.totalorder %s680_s0, %s454_s25  ;;  %p458_p3 = scmp.lt.u32.totalorder %s454_s25, %s680_s0 }
  0x29   :  { %p460_p4 = pnand %p458_p3, %p455_p2 }
  0x2b   :  { %463 = shalt.err (!%p460_p4)
}
  0x2c   :  { %s464_s3 = scalar_lea.vmem %s20_s19, 128  ;;  %p469_p6 = scmp.lt.s32.totalorder %s20_s19, %s20_s19 }
  0x2d   :  { %p465_p5 = scmp.ne.s32.totalorder %s20_s19, %s464_s3  ;;  %p470_p7 = scmp.lt.s32.totalorder %s464_s3, %s464_s3 }
  0x2f   :  { %p471_p8 = por %p470_p7, %p469_p6 }
  0x31   :  { %p472_p9 = pnand %p471_p8, %p465_p5 }
  0x33   :  { %475 = shalt.err (!%p472_p9)
}
  0x34   :  { %25 = dma.hbm_to_vmem [thread:$0]  %s680_s0, 128, %s20_s19, [#allocation4], %s552_s30, %s552_s30, %s553_s6  }
  0x35   :  { %s476_s10 = scalar_lea.hbm %s682_s2, 16 }
  0x36   :  { %p477_p10 = scmp.ne.s32.totalorder %s682_s2, %s476_s10  ;;  %p480_p11 = scmp.lt.u32.totalorder %s476_s10, %s682_s2 }
  0x38   :  { %p482_p12 = pnand %p480_p11, %p477_p10 }
  0x3a   :  { %485 = shalt.err (!%p482_p12)
}
  0x3b   :  { %s486_s15 = scalar_lea.vmem %s45_s22, 16  ;;  %s490_s16 = scalar_lea.vmem %s45_s22, 32 }
  0x3c   :  { %p487_p13 = scmp.ne.s32.totalorder %s45_s22, %s486_s15  ;;  %p491_p0 = scmp.lt.s32.totalorder %s45_s22, %s45_s22 }
  0x3d   :  { %p492_p1 = scmp.lt.s32.totalorder %s490_s16, %s486_s15 }
  0x3f   :  { %p493_p2 = por %p492_p1, %p491_p0 }
  0x41   :  { %p494_p3 = pnand %p493_p2, %p487_p13 }
  0x43   :  { %497 = shalt.err (!%p494_p3)
}
  0x44   :  { %47 = dma.hbm_to_vmem [thread:$0]  %s682_s2, 16, %s45_s22, [#allocation7]  }
  0x45   :  { %s556_s6 = smov [#allocation11]   ;;  %s498_s19 = scalar_lea.hbm %s684_s4, 16 }
  0x46   :  { %s66_s1 = sshll.u32 %s556_s6, 4  ;;  %p499_p4 = scmp.ne.s32.totalorder %s684_s4, %s498_s19  ;;  %s67_s1 = int_to_ptr.vmem [resolvable:$true] %s66_s1 }
  0x47   :  { %p502_p5 = scmp.lt.u32.totalorder %s498_s19, %s684_s4 }
  0x49   :  { %p504_p6 = pnand %p502_p5, %p499_p4 }
  0x4b   :  { %507 = shalt.err (!%p504_p6)
}
  0x4c   :  { %s508_s26 = scalar_lea.vmem %s67_s1, 16  ;;  %s512_s2 = scalar_lea.vmem %s67_s1, 32 }
  0x4d   :  { %p509_p7 = scmp.ne.s32.totalorder %s67_s1, %s508_s26  ;;  %p513_p8 = scmp.lt.s32.totalorder %s67_s1, %s67_s1 }
  0x4e   :  { %p514_p9 = scmp.lt.s32.totalorder %s512_s2, %s508_s26 }
  0x50   :  { %p515_p10 = por %p514_p9, %p513_p8 }
  0x52   :  { %p516_p11 = pnand %p515_p10, %p509_p7 }
  0x54   :  { %519 = shalt.err (!%p516_p11)
}
  0x55   :  { %69 = dma.hbm_to_vmem [thread:$0]  %s684_s4, 16, %s67_s1, [#allocation10]  }
  0x56   :  { %542 = dma.done.wait [#allocation4], 128  }
  0x57   :  { %543 = vsyncadd [#allocation4], 4294967168 }
  0x58   :  { %544 = dma.done.wait [#allocation7], 528  }
  0x59   :  { %545 = vsyncadd [#allocation7], 4294966768 }
  0x5a   :  { %546 = dma.done.wait [#allocation10], 1040  }
  0x5b   :  { %547 = vsyncadd [#allocation10], 4294966256  ;;  %v557_v0 = vmov 0.0   ;;  %vm558_vm0 = vmmov 0   ;;  %v393_v1 = vld [vmem:[#allocation6] sm:$0xff]   ;;  %v394_v2 = vld [vmem:[#allocation6 + $0x8] sm:$0xff]  }
  0x5c   :  { %349 = vmatprep.subr.bf16.mxu0 %v557_v0  ;;  %357 = vmatprep.mubr.msk.bf16.mxu0 %vm558_vm0, %v557_v0  ;;  %v398_v3 = vld [vmem:[#allocation9] sm:$0xff]   ;;  %v395_v4 = vld [vmem:[#allocation6 + $0x10] sm:$0xff]   ;;  %v396_v6 = vld [vmem:[#allocation6 + $0x18] sm:$0xff]   ;;  %vm136_vm1 = vcmask 523264   ;;  %s559_s4 = smov [#allocation12]  }
  0x5d   :  { %361 = vmatprep.subr.bf16.mxu1 %v557_v0  ;;  %377 = vmatprep.mubr.msk.bf16.mxu1 %vm558_vm0, %v557_v0  ;;  %v399_v5 = vld [vmem:[#allocation9 + $0x8] sm:$0xff]   ;;  %v400_v7 = vld [vmem:[#allocation9 + $0x10] sm:$0xff]   ;;  %v401_v9 = vld [vmem:[#allocation9 + $0x18] sm:$0xff]   ;;  %s305_s28 = sshll.u32 %s559_s4, 4  ;;  %s306_s28 = int_to_ptr.vmem [resolvable:$true] %s305_s28 }
  0x5e   :  { %350 = vmatpush3.bf16.msra.mxu0 %v393_v1  ;;  %362 = vmatpush3.bf16.msra.mxu1 %v398_v3  ;;  %v397_v8 = vld [vmem:[#allocation3] sm:$0xff]   ;;  %v402_v10 = vld [vmem:[#allocation9 + $0x20] sm:$0xff]   ;;  %v403_v11 = vld [vmem:[#allocation9 + $0x28] sm:$0xff]   ;;  %s520_s29 = scalar_lea.vmem %s306_s28, 256  ;;  %p525_p13 = scmp.lt.s32.totalorder %s306_s28, %s306_s28 }
  0x5f   :  { %351 = vmatprep.subr.bf16.mxu0 %v557_v0  ;;  %363 = vmatprep.subr.bf16.mxu1 %v557_v0  ;;  %v404_v12 = vld [vmem:[#allocation9 + $0x30] sm:$0xff]   ;;  %v405_v13 = vld [vmem:[#allocation9 + $0x38] sm:$0xff]   ;;  %v326_v24 = vld [vmem:[#allocation11] ss:$0 sm:$0xff]  ;;  %p521_p12 = scmp.ne.s32.totalorder %s306_s28, %s520_s29  ;;  %p526_p0 = scmp.lt.s32.totalorder %s520_s29, %s520_s29 }
  0x60   :  { %v319_v14 = vld [vmem:[#allocation8] ss:$0 sm:$0xff] }
  0x61   :  { %p527_p1 = por %p526_p0, %p525_p13 }
  0x62   :  { %352 = vmatpush3.bf16.msra.mxu0 %v394_v2  ;;  %364 = vmatpush3.bf16.msra.mxu1 %v399_v5 }
  0x63   :  { %353 = vmatprep.subr.bf16.mxu0 %v557_v0  ;;  %365 = vmatprep.subr.bf16.mxu1 %v557_v0  ;;  %p528_p2 = pnand %p527_p1, %p521_p12 }
  0x66   :  { %354 = vmatpush3.bf16.msra.mxu0 %v395_v4  ;;  %366 = vmatpush3.bf16.msra.mxu1 %v400_v7 }
  0x67   :  { %355 = vmatprep.subr.bf16.mxu0 %v557_v0  ;;  %367 = vmatprep.subr.bf16.mxu1 %v557_v0 }
  0x6a   :  { %356 = vmatpush3.bf16.msra.mxu0 %v396_v6  ;;  %368 = vmatpush3.bf16.msra.mxu1 %v401_v9 }
  0x6b   :  { %369 = vmatprep.subr.bf16.mxu1 %v557_v0 }
  0x6d   :  { %358 = vmatmul.mubr.msk.bf16.vlgmr.msra.gmra.mrb[0].mxu0 %vm136_vm1, %v397_v8 }
  0x6e   :  { %370 = vmatpush3.bf16.msra.mxu1 %v402_v10 }
  0x6f   :  { %371 = vmatprep.subr.bf16.mxu1 %v557_v0 }
  0x72   :  { %372 = vmatpush3.bf16.msra.mxu1 %v403_v11 }
  0x73   :  { %373 = vmatprep.subr.bf16.mxu1 %v557_v0 }
  0x76   :  { %374 = vmatpush3.bf16.msra.mxu1 %v404_v12 }
  0x77   :  { %375 = vmatprep.subr.bf16.mxu1 %v557_v0 }
  0x7a   :  { %376 = vmatpush3.bf16.msra.mxu1 %v405_v13 }
 0x140   :  { %v174_v15 = vpop.f32.mrb[0].mxu0 }
 0x141   :  { %v175_v16 = vadd.f32 %v319_v14, %v174_v15  ;;  %v359_v17 = vpop.f32.mrb[1].mxu0 }
 0x142   :  { %v177_v18 = vpop.f32.mrb[2].mxu0 }
 0x143   :  { %v178_v19 = vadd.f32 %v319_v14, %v177_v18  ;;  %v360_v20 = vpop.f32.mrb[3].mxu0  ;;  %406 = vtanh.f32 %v175_v16 }
 0x145   :  { %408 = vtanh.f32 %v178_v19 }
 0x14d   :  { %v407_v21 = vpop.eup %406 }
 0x14f   :  { %v409_v22 = vpop.eup %408 }
 0x150   :  { %v183_v23 = vpack.c.bf16 %v409_v22, %v407_v21 }
 0x152   :  { %378 = vmatmul.mubr.bf16.vlgmr.msra.gmra.mrb[0].mxu1 %v183_v23 }
 0x225   :  { %v291_v25 = vpop.f32.mrb[0].mxu1 }
 0x226   :  { %v292_v26 = vadd.f32 %v326_v24, %v291_v25  ;;  %v379_v27 = vpop.f32.mrb[1].mxu1 }
 0x227   :  { %v294_v28 = vpop.f32.mrb[2].mxu1 }
 0x228   :  { %298 = vst [vmem:[#allocation12] sm:$0xff] %v292_v26  ;;  %v295_v29 = vadd.f32 %v326_v24, %v294_v28  ;;  %v380_v30 = vpop.f32.mrb[3].mxu1 }
 0x22a   :  { %299 = vst [vmem:[#allocation12 + $0x8] sm:$0xff] %v295_v29 }
 0x22b   :  { %531 = shalt.err (!%p528_p2)
}
 0x22c   :  { %s532_s7 = scalar_lea.hbm %s685_s5, 256 }
 0x22d   :  { %p533_p3 = scmp.ne.s32.totalorder %s685_s5, %s532_s7  ;;  %p536_p4 = scmp.lt.u32.totalorder %s532_s7, %s685_s5 }
 0x22f   :  { %p538_p5 = pnand %p536_p4, %p533_p3 }
 0x231   :  { %541 = shalt.err (!%p538_p5)
}
 0x232   :  { %s560_s12 = smov 128   ;;  %s561_s13 = smov 8  }
 0x233   :  { %311 = dma.vmem_to_hbm [thread:$0]  %s306_s28, 256, %s685_s5, [#allocation5], %s560_s12, %s560_s12, %s561_s13  }
 0x234   :  { %548 = dma.done.wait [#allocation5], 256  }
 0x235   :  { %549 = vsyncadd [#allocation5], 4294967040 }
 0x236   :  { %315 = vsyncpa [#allocation4], 1 }
 0x237   :  { %316 = vsyncpa [#allocation7], 1 }
 0x238   :  { %317 = vsyncpa [#allocation10], 1 }
 0x239   :  { %318 = vsyncpa [#allocation5], 1 }

</bundles_post_ra>
